<compile_context>
chip_gen: v5e
topology: v5e:2x2
jax: 0.10.0
libtpu: 0.0.40
codegen_flags: <defaults>
</compile_context>

<pallas_src>
import functools

import jax
import jax.numpy as jnp
from jax.experimental import pallas as pl
from jax.experimental.pallas import tpu as pltpu


def _discriminator_kernel(w_ref, b_ref, x_ref, o_ref):
    # w_ref: VMEM (IN, OUT)  -- resident across the grid
    # b_ref: SMEM (OUT,)     -- bias scalars
    # x_ref: VMEM (IN, TB)   -- batch on the 128-wide lane axis
    # o_ref: VMEM (OUT, TB)  -- lane-dense output tile
    out_dim = o_ref.shape[0]

    x = x_ref[...]          # (IN, TB) f32
    w = w_ref[...]          # (IN, OUT) f32

    for j in range(out_dim):                 # OUT is tiny (default 1): unrolled
        # Dense full-tile multiply + sublane reduction (XLU), then bias.
        acc = jnp.sum(x * w[:, j:j + 1], axis=0, keepdims=True) + b_ref[j]
        # sigmoid(x) = 0.5*tanh(0.5*x) + 0.5 : EUP tanh, no VPU divide,
        # numerically stable; matches jax.nn.sigmoid within 1e-5.
        o_ref[j:j + 1, :] = (0.5 * jnp.tanh(0.5 * acc) + 0.5).astype(o_ref.dtype)


@functools.partial(jax.jit, static_argnames=("tb",))
def discriminator_forward(x, w, b, *, tb=None):
    """x: (B, 7) f32, w: (7, OUT) f32, b: (OUT,) f32  ->  (B, OUT) f32."""
    B, IN = x.shape
    IN_w, OUT = w.shape
    assert IN_w == IN

    if tb is None:
        if B <= 128:
            tb = B                                  # single block = full array
        else:
            # 128-aligned, aim for >= 2 tiles so DMA overlaps compute and both
            # v7x TensorCores get work; cap at 128K lanes (~3.5 MiB/buffer).
            tb = int(min(128 * pl.cdiv(B, 2 * 128), 131072))
    n_tiles = pl.cdiv(B, tb)

    # Lane-dense layout: batch on the lane axis.  No explicit pad -- Pallas
    # masks the partial last block on its own.
    xt = jnp.transpose(x)                           # (IN, B)

    out_t = pl.pallas_call(
        _discriminator_kernel,
        out_shape=jax.ShapeDtypeStruct((OUT, B), jnp.float32),
        grid=(n_tiles,),
        in_specs=[
            pl.BlockSpec((IN, OUT), lambda i: (0, 0)),            # w (resident)
            pl.BlockSpec(memory_space=pltpu.MemorySpace.SMEM),    # b scalars
            pl.BlockSpec((IN, tb), lambda i: (0, i)),             # x batch tile
        ],
        out_specs=pl.BlockSpec((OUT, tb), lambda i: (0, i)),      # lane-dense out
        compiler_params=pltpu.CompilerParams(
            dimension_semantics=("parallel",),
            # Allow XLA to fuse the wrapper transpose into the input pipeline
            # of this call (only the x operand).
            allow_input_fusion=[False, False, True]),
        cost_estimate=pl.CostEstimate(
            flops=2 * B * IN * OUT,
            transcendentals=B * OUT,
            bytes_accessed=4 * (B * IN + IN * OUT + OUT + B * OUT)),
    )(w, b, xt)

    return jnp.transpose(out_t)                     # (B, OUT)


def reference_forward(x, w, b):
    return jax.nn.sigmoid(x @ w + b[None, :])


if __name__ == "__main__":
    key = jax.random.PRNGKey(0)
    kx, kw, kb, kx2 = jax.random.split(key, 4)

    IN, OUT = 7, 1  # nn.Linear(7, outputn=1)

    # Deterministic PyTorch-style init: U(-1/sqrt(in), 1/sqrt(in))
    bound = 1.0 / jnp.sqrt(jnp.float32(IN))
    w = jax.random.uniform(kw, (IN, OUT), jnp.float32, -bound, bound)
    b = jax.random.uniform(kb, (OUT,), jnp.float32, -bound, bound)

    # Small primary case (single block spanning the whole batch).
    B = 8
    x = jax.random.normal(kx, (B, IN), jnp.float32)
    out = jax.block_until_ready(discriminator_forward(x, w, b))
    ref = reference_forward(x, w, b)
    assert out.shape == (B, OUT)
    assert jnp.allclose(out, ref, atol=1e-5, rtol=1e-5)

    # Secondary case: two batch tiles with a masked partial last block
    # (B=300 -> tb=256, grid=(2,), no wrapper-side padding).
    B2 = 300
    x2 = jax.random.normal(kx2, (B2, IN), jnp.float32)
    out2 = jax.block_until_ready(discriminator_forward(x2, w, b))
    ref2 = reference_forward(x2, w, b)
    assert out2.shape == (B2, OUT)
    assert jnp.allclose(out2, ref2, atol=1e-5, rtol=1e-5)

    print("KERNEL_OK")
</pallas_src>

<mosaic_0001>
module attributes {stable_mosaic.version = 11 : i64} {
  func.func @_discriminator_kernel(%arg0: i32, %arg1: memref<7x1xf32, #tpu.memory_space<vmem>>, %arg2: memref<1xf32, #tpu.memory_space<smem>>, %arg3: memref<7x8xf32, #tpu.memory_space<vmem>>, %arg4: memref<1x8xf32, #tpu.memory_space<vmem>>) attributes {dimension_semantics = [#tpu.dimension_semantics<parallel>], iteration_bounds = array<i64: 1>, scalar_prefetch = 0 : i64, scratch_operands = 0 : i64, tpu.core_type = #tpu.core_type<tc>, window_params = [{pipeline_mode = #tpu.pipeline_mode<synchronous>, transform_indices = @transform_0, window_bounds = array<i64: 7, 1>}, {transform_indices = @transform_1, window_bounds = array<i64: 1>}, {transform_indices = @transform_2, window_bounds = array<i64: 7, 8>}, {transform_indices = @transform_3, window_bounds = array<i64: 1, 8>}]} {
    %c0 = arith.constant 0 : index
    %c0_0 = arith.constant 0 : index
    %0 = vector.load %arg3[%c0, %c0_0] : memref<7x8xf32, #tpu.memory_space<vmem>>, vector<7x8xf32>
    %c0_1 = arith.constant 0 : index
    %c0_2 = arith.constant 0 : index
    %1 = vector.load %arg1[%c0_1, %c0_2] : memref<7x1xf32, #tpu.memory_space<vmem>>, vector<7x1xf32>
    %2 = vector.broadcast %1 : vector<7x1xf32> to vector<7x8xf32>
    %3 = arith.mulf %0, %2 : vector<7x8xf32>
    %cst = arith.constant dense<0.000000e+00> : vector<8xf32>
    %4 = vector.multi_reduction <add>, %3, %cst [0] : vector<7x8xf32> to vector<8xf32>
    %5 = vector.shape_cast %4 : vector<8xf32> to vector<1x8xf32>
    %c0_3 = arith.constant 0 : index
    %6 = memref.load %arg2[%c0_3] : memref<1xf32, #tpu.memory_space<smem>>
    %7 = vector.broadcast %6 : f32 to vector<1x8xf32>
    %8 = arith.addf %5, %7 : vector<1x8xf32>
    %cst_4 = arith.constant 5.000000e-01 : f32
    %9 = vector.broadcast %cst_4 : f32 to vector<1x8xf32>
    %10 = arith.mulf %9, %8 : vector<1x8xf32>
    %11 = math.tanh %10 : vector<1x8xf32>
    %cst_5 = arith.constant 5.000000e-01 : f32
    %12 = vector.broadcast %cst_5 : f32 to vector<1x8xf32>
    %13 = arith.mulf %12, %11 : vector<1x8xf32>
    %cst_6 = arith.constant 5.000000e-01 : f32
    %14 = vector.broadcast %cst_6 : f32 to vector<1x8xf32>
    %15 = arith.addf %13, %14 : vector<1x8xf32>
    %c0_7 = arith.constant 0 : index
    %c0_8 = arith.constant 0 : index
    %16 = vector.load %arg4[%c0_7, %c0_8] : memref<1x8xf32, #tpu.memory_space<vmem>>, vector<1x8xf32>
    tpu.vector_store %arg4[%c0_7, %c0_8], %15 {strides = array<i32>} : memref<1x8xf32, #tpu.memory_space<vmem>>, vector<1x8xf32>,
    return
  }
  func.func @transform_0(%arg0: i32) -> (i32, i32) {
    %c0_i32 = arith.constant 0 : i32
    %c0_i32_0 = arith.constant 0 : i32
    %c0_i32_1 = arith.constant 0 : i32
    return %c0_i32, %c0_i32_0 : i32, i32
  }
  func.func @transform_1(%arg0: i32) -> i32 {
    %c0_i32 = arith.constant 0 : i32
    %c0_i32_0 = arith.constant 0 : i32
    return %c0_i32 : i32
  }
  func.func @transform_2(%arg0: i32) -> (i32, i32) {
    %c0_i32 = arith.constant 0 : i32
    %c0_i32_0 = arith.constant 0 : i32
    return %c0_i32, %arg0 : i32, i32
  }
  func.func @transform_3(%arg0: i32) -> (i32, i32) {
    %c0_i32 = arith.constant 0 : i32
    %c0_i32_0 = arith.constant 0 : i32
    return %c0_i32, %arg0 : i32, i32
  }
}

</mosaic_0001>

<bundles_post_ra>
// kernel: discriminator_forward.2
= control target key start
LH: loop header
LB: loop body
LE: loop exit
PB: predicated region body
PF: predicated region fallthrough
CT: control target
= control target key end

     0   :  { %s126_s0 = inlined_call_operand.vmem [shape: f32[7,1], index: 0, kind: input, shape index: {}]   ;;  %s127_s1 = inlined_call_operand.<no memory space> [shape: f32[1], index: 1, kind: input, shape index: {}]   ;;  %s128_s2 = inlined_call_operand.vmem [shape: f32[8,7], index: 2, kind: input, shape index: {}]   ;;  %s129_s3 = inlined_call_operand.hbm [shape: f32[1,8], index: 3, kind: output, shape index: {}]  }
   0x1   :  { %v21_v0 = vld [vmem:[%s126_s0] sm:$0x7f] }
   0x2   :  { %9 = vsyncpa [#allocation4], 0  ;;  %v92_v1 = vmov 0   ;;  %v16_v2 = vld [vmem:[%s128_s2] sm:$0x7f]  ;;  %vm28_vm0 = vcmask 63488   ;;  %v37_v12 = vstv %s127_s1 }
   0x3   :  { %63 = vset.pattern.permute.xlu0 %v92_v1  ;;  %19 = vst [vmem:[#allocation5] sm:$0xff] %v16_v2  ;;  %s93_s2 = smov [#allocation3]   ;;  %s52_s20 = sshll.u32 %s129_s3, 4  ;;  %vm43_vm1 = vcmask 57344   ;;  %s53_s20 = int_to_ptr.hbm [resolvable:$true] %s52_s20 }
   0x4   :  { %24 = vperm.xlu0 %63, %v21_v0   ;;  %s50_s17 = sshll.u32 %s93_s2, 4  ;;  %s51_s17 = int_to_ptr.vmem [resolvable:$true] %s50_s17 }
   0xa   :  { %v20_v3 = vld [vmem:[#allocation5] sm:$0x7f] }
  0x76   :  { %v25_v4 = vpop.permute.xlu0 %24 }
  0x77   :  { %v27_v5 = vmul.f32 %v25_v4, %v20_v3 }
  0x79   :  { %v29_v6 = vsel %vm28_vm0, %v27_v5, 0.0 }
  0x7a   :  { %v30_v7 = vrot.slane %v29_v6, 4 }
  0x7c   :  { %v31_v8 = vadd.f32 %v30_v7, %v29_v6 }
  0x7e   :  { %v32_v9 = vrot.slane %v31_v8, 2 }
  0x80   :  { %v33_v10 = vadd.f32 %v32_v9, %v31_v8 }
  0x82   :  { %v34_v11 = vrot.slane %v33_v10, 1 }
  0x84   :  { %v35_v13 = vadd.f32 %v34_v11, %v33_v10 }
  0x86   :  { %v38_v14 = vadd.f32 %v37_v12, %v35_v13 }
  0x88   :  { %v39_v15 = vmul.f32 0.5, %v38_v14 }
  0x8a   :  { %64 = vtanh.f32 %v39_v15 }
  0x90   :  { %v65_v16 = vpop.eup %64 }
  0x91   :  { %v41_v17 = vmul.f32 0.5, %v65_v16 }
  0x93   :  { %v42_v18 = vadd.f32 0.5, %v41_v17 }
  0x95   :  { %44 = vst.msk [vmem:[#allocation3] sm:$0x1] %vm43_vm1, %v42_v18 }
  0x96   :  { %55 = dma.vmem_to_hbm [thread:$0]  %s51_s17, 16, %s53_s20, [#allocation4]  }
  0x97   :  { %90 = dma.done.wait [#allocation4], 16  }
  0x98   :  { %91 = vsyncadd [#allocation4], 4294967280 }
  0x99   :  { %60 = vsyncpa [#allocation4], 1 }

</bundles_post_ra>
